<compile_context>
chip_gen: v7x
topology: tpu7x:2x2x1
jax: 0.10.0
libtpu: 0.0.40
codegen_flags: <defaults>
</compile_context>

<pallas_src>
import jax
import jax.numpy as jnp
from jax import lax
from jax.experimental import pallas as pl
from jax.experimental.pallas import tpu as pltpu

EPS = 1e-5

# Tunables (sweepable).
TARGET_TILE_BYTES = 8 * 1024 * 1024    # padded VMEM bytes per x buffer per grid step
MAX_ROWS_PER_TILE = 65536              # cap on original rows per grid step
FUSED_VMEM_BUDGET = 24 * 1024 * 1024   # conservative: fits default scoped VMEM on v5e/v6e/v7x
VMEM_LIMIT_BYTES = 48 * 1024 * 1024    # explicit scoped-VMEM limit for the tiled two-pass path


def _round_up(v, m):
    return (v + m - 1) // m * m


def _pick_tile_rows(n_rows, padded_row_bytes, max_rows):
    t = min(max_rows, TARGET_TILE_BYTES // padded_row_bytes)
    t = max(8, (t // 8) * 8)
    return n_rows if n_rows <= t else t


# --------------------------------------------------------------------------- #
# Fused path: BN stats + BN + Linear + log_softmax with a single HBM read of x.
# --------------------------------------------------------------------------- #
def _fused_kernel(x_ref, gamma_ref, beta_ref, w_ref, b_ref, o_ref):
    x = x_ref[...].astype(jnp.float32)                          # (N, D), VMEM-resident
    inv_n = 1.0 / x.shape[0]
    mean = jnp.sum(x, axis=0, keepdims=True) * inv_n            # (1, D)
    xc = x - mean
    var = jnp.sum(xc * xc, axis=0, keepdims=True) * inv_n       # centered -> no cancellation
    x_bn = xc * (gamma_ref[...] * lax.rsqrt(var + EPS)) + beta_ref[...]
    logits = jnp.dot(x_bn, w_ref[...],
                     preferred_element_type=jnp.float32) + b_ref[...]   # (N, C) on MXU
    m = jnp.max(logits, axis=1, keepdims=True)
    shifted = logits - m
    lse = jnp.log(jnp.sum(jnp.exp(shifted), axis=1, keepdims=True))     # exp/log -> EUP
    o_ref[...] = (shifted - lse).astype(o_ref.dtype)


# --------------------------------------------------------------------------- #
# Two-pass fallback (large N).
# --------------------------------------------------------------------------- #
def _make_stats_kernel(tile_rows, n_rows, tiles_per_core):
    """Pass 1: per-core accumulation of column sum / sum-of-squares of x2d."""
    needs_mask = (2 * tiles_per_core * tile_rows) != n_rows   # ragged tail or core overhang

    def stats_kernel(x_ref, stats_ref):
        ci = pl.program_id(0)   # TensorCore ('parallel') axis
        ii = pl.program_id(1)   # reduction ('arbitrary') axis

        @pl.when(ii == 0)
        def _():
            stats_ref[...] = jnp.zeros_like(stats_ref)

        x = x_ref[...].astype(jnp.float32)                     # (tile_rows, d2)
        if needs_mask:
            tile = ci * tiles_per_core + ii
            row = lax.broadcasted_iota(jnp.int32, x.shape, 0) + tile * tile_rows
            x = jnp.where(row < n_rows, x, 0.0)

        s = jnp.sum(x, axis=0, keepdims=True)                  # (1, d2)
        ss = jnp.sum(x * x, axis=0, keepdims=True)             # (1, d2)
        stats_ref[...] += jnp.concatenate([s, ss], axis=0)[None]   # (1, 2, d2)

    return stats_kernel


def _linear_logsoftmax_kernel(x_ref, w_ref, b_ref, o_ref):
    """Pass 2: logits = x @ W_eff + b_eff (BN pre-folded), then log_softmax.

    Ragged final tile: rows past N hold unspecified data; max-subtraction keeps
    exp() finite and Pallas discards the out-of-bounds rows on writeback."""
    x = x_ref[...].astype(jnp.float32)                               # (tn, D)
    logits = jnp.dot(x, w_ref[...],
                     preferred_element_type=jnp.float32) + b_ref[...]    # (tn, C)
    m = jnp.max(logits, axis=1, keepdims=True)
    shifted = logits - m
    lse = jnp.log(jnp.sum(jnp.exp(shifted), axis=1, keepdims=True))
    o_ref[...] = (shifted - lse).astype(o_ref.dtype)


def only_linear_layer(x, gamma, beta, w, b, *,
                      max_rows_per_tile=MAX_ROWS_PER_TILE,
                      allow_fused=True):
    """x: (N, D); gamma/beta: (1, D); w: (D, C) (= W.T of the torch Linear); b: (1, C)."""
    n, d = x.shape
    c = w.shape[1]

    padded_x_row = 4 * _round_up(d, 128)   # lane-padded f32 bytes per row in VMEM
    padded_o_row = 4 * _round_up(c, 128)

    # ---- Fused single-read path (x + output, double-buffer-safe, within scoped VMEM).
    if allow_fused and n * (padded_x_row + padded_o_row) * 2 <= FUSED_VMEM_BUDGET:
        return pl.pallas_call(
            _fused_kernel,
            out_shape=jax.ShapeDtypeStruct((n, c), jnp.float32),
            grid=(1,),
            in_specs=[pl.BlockSpec((n, d), lambda i: (0, 0)),
                      pl.BlockSpec((1, d), lambda i: (0, 0)),
                      pl.BlockSpec((1, d), lambda i: (0, 0)),
                      pl.BlockSpec((d, c), lambda i: (0, 0)),
                      pl.BlockSpec((1, c), lambda i: (0, 0))],
            out_specs=pl.BlockSpec((n, c), lambda i: (0, 0)),
            compiler_params=pltpu.CompilerParams(
                dimension_semantics=("arbitrary",)),
        )(x, gamma, beta, w, b)

    # ---- Pass 1: global batch statistics, lane-dense view when D packs into 128 lanes.
    g = 128 // d if (0 < d < 128 and 128 % d == 0) else 1
    grouped = g > 1 and n % g == 0
    x2d = x.reshape(n // g, d * g) if grouped else x   # free row-major view
    n2, d2 = x2d.shape

    tn1 = _pick_tile_rows(n2, 4 * _round_up(d2, 128),
                          max(1, max_rows_per_tile // (g if grouped else 1)))
    total_tiles = pl.cdiv(n2, tn1)
    tpc = pl.cdiv(total_tiles, 2)      # tiles per TensorCore (leading 'parallel' axis)
    last_blk = total_tiles - 1

    stats = pl.pallas_call(
        _make_stats_kernel(tn1, n2, tpc),
        out_shape=jax.ShapeDtypeStruct((2, 2, d2), jnp.float32),   # [core, {sum,sumsq}, d2]
        grid=(2, tpc),
        in_specs=[pl.BlockSpec(
            (tn1, d2),
            lambda ci, ii: (jnp.minimum(ci * tpc + ii, last_blk), 0))],
        out_specs=pl.BlockSpec((1, 2, d2), lambda ci, ii: (ci, 0, 0)),
        compiler_params=pltpu.CompilerParams(
            dimension_semantics=("parallel", "arbitrary"),
            vmem_limit_bytes=VMEM_LIMIT_BYTES),
    )(x2d)

    # ---- Fold: stats -> BN scale/shift -> folded into the linear layer (O(D*C), once).
    s = stats[0, 0] + stats[1, 0]      # (d2,)
    ss = stats[0, 1] + stats[1, 1]     # (d2,)
    if grouped:
        s = jnp.sum(s.reshape(g, d), axis=0)
        ss = jnp.sum(ss.reshape(g, d), axis=0)
    inv_n = 1.0 / n
    mean = (s * inv_n).reshape(1, d)
    # E[x^2] - mean^2 loses precision if |mean| >> std; the fused path (used whenever
    # x is VMEM-resident) uses the centered formula instead.
    var = jnp.maximum((ss * inv_n).reshape(1, d) - mean * mean, 0.0)
    scale = gamma * lax.rsqrt(var + EPS)     # (1, D)
    shift = beta - mean * scale              # (1, D)
    w_eff = w * jnp.reshape(scale, (d, 1))   # (D, C)
    b_eff = b + shift @ w                    # (1, C)

    # ---- Pass 2: row-tiled matmul + log_softmax, row axis 'parallel' (2 TCs on v7x).
    tn2 = _pick_tile_rows(n, padded_x_row, max_rows_per_tile)
    return pl.pallas_call(
        _linear_logsoftmax_kernel,
        out_shape=jax.ShapeDtypeStruct((n, c), jnp.float32),
        grid=(pl.cdiv(n, tn2),),
        in_specs=[pl.BlockSpec((tn2, d), lambda i: (i, 0)),
                  pl.BlockSpec((d, c), lambda i: (0, 0)),
                  pl.BlockSpec((1, c), lambda i: (0, 0))],
        out_specs=pl.BlockSpec((tn2, c), lambda i: (i, 0)),
        compiler_params=pltpu.CompilerParams(
            dimension_semantics=("parallel",),
            vmem_limit_bytes=VMEM_LIMIT_BYTES),
    )(x, w_eff, b_eff)


def reference(x, gamma, beta, w, b):
    mean = jnp.mean(x, axis=0, keepdims=True)
    var = jnp.mean((x - mean) ** 2, axis=0, keepdims=True)
    x_bn = (x - mean) / jnp.sqrt(var + EPS) * gamma + beta
    logits = x_bn @ w + b
    return jax.nn.log_softmax(logits, axis=1)


if __name__ == "__main__":
    key = jax.random.PRNGKey(0)
    N, D, C = 8, 32, 10
    kx, kw, kb, kx2 = jax.random.split(key, 4)

    x = jax.random.normal(kx, (N, D), dtype=jnp.float32)

    # Deterministic parameter init (shapes implied by LazyBatchNorm1d / LazyLinear(10)).
    gamma = jnp.ones((1, D), dtype=jnp.float32)    # BN weight init = 1
    beta = jnp.zeros((1, D), dtype=jnp.float32)    # BN bias init = 0
    bound = 1.0 / float(D) ** 0.5
    w = jax.random.uniform(kw, (D, C), minval=-bound, maxval=bound,
                           dtype=jnp.float32)      # stored as (D, 10) = W.T
    b = jax.random.uniform(kb, (1, C), minval=-bound, maxval=bound,
                           dtype=jnp.float32)

    # Fused single-read path (small N).
    out = only_linear_layer(x, gamma, beta, w, b)
    out = jax.block_until_ready(out)
    ref = reference(x, gamma, beta, w, b)
    assert out.shape == (N, C)
    assert jnp.allclose(out, ref, atol=1e-4, rtol=1e-4), "fused path mismatch vs reference"

    # Exercise the tiled two-pass large-N path at small cost (forced small tiles).
    N2 = 1000
    x2 = jax.random.normal(kx2, (N2, D), dtype=jnp.float32)
    out2 = only_linear_layer(x2, gamma, beta, w, b,
                             max_rows_per_tile=96, allow_fused=False)
    out2 = jax.block_until_ready(out2)
    ref2 = reference(x2, gamma, beta, w, b)
    assert out2.shape == (N2, C)
    assert jnp.allclose(out2, ref2, atol=1e-3, rtol=1e-3), "two-pass path mismatch vs reference"

    print("KERNEL_OK")
</pallas_src>

<mosaic_0001>
module attributes {stable_mosaic.version = 11 : i64} {
  func.func @_fused_kernel(%arg0: i32, %arg1: memref<8x32xf32, #tpu.memory_space<vmem>>, %arg2: memref<1x32xf32, #tpu.memory_space<vmem>>, %arg3: memref<1x32xf32, #tpu.memory_space<vmem>>, %arg4: memref<32x10xf32, #tpu.memory_space<vmem>>, %arg5: memref<1x10xf32, #tpu.memory_space<vmem>>, %arg6: memref<8x10xf32, #tpu.memory_space<vmem>>) attributes {dimension_semantics = [#tpu.dimension_semantics<arbitrary>], iteration_bounds = array<i64: 1>, scalar_prefetch = 0 : i64, scratch_operands = 0 : i64, tpu.core_type = #tpu.core_type<tc>, window_params = [{pipeline_mode = #tpu.pipeline_mode<synchronous>, transform_indices = @transform_0, window_bounds = array<i64: 8, 32>}, {pipeline_mode = #tpu.pipeline_mode<synchronous>, transform_indices = @transform_1, window_bounds = array<i64: 1, 32>}, {pipeline_mode = #tpu.pipeline_mode<synchronous>, transform_indices = @transform_2, window_bounds = array<i64: 1, 32>}, {pipeline_mode = #tpu.pipeline_mode<synchronous>, transform_indices = @transform_3, window_bounds = array<i64: 32, 10>}, {pipeline_mode = #tpu.pipeline_mode<synchronous>, transform_indices = @transform_4, window_bounds = array<i64: 1, 10>}, {pipeline_mode = #tpu.pipeline_mode<synchronous>, transform_indices = @transform_5, window_bounds = array<i64: 8, 10>}]} {
    %c0 = arith.constant 0 : index
    %c0_0 = arith.constant 0 : index
    %0 = vector.load %arg1[%c0, %c0_0] : memref<8x32xf32, #tpu.memory_space<vmem>>, vector<8x32xf32>
    %cst = arith.constant dense<0.000000e+00> : vector<32xf32>
    %1 = vector.multi_reduction <add>, %0, %cst [0] : vector<8x32xf32> to vector<32xf32>
    %2 = vector.shape_cast %1 : vector<32xf32> to vector<1x32xf32>
    %cst_1 = arith.constant 1.250000e-01 : f32
    %3 = vector.broadcast %cst_1 : f32 to vector<1x32xf32>
    %4 = arith.mulf %2, %3 : vector<1x32xf32>
    %5 = vector.broadcast %4 : vector<1x32xf32> to vector<8x32xf32>
    %6 = arith.subf %0, %5 : vector<8x32xf32>
    %7 = arith.mulf %6, %6 : vector<8x32xf32>
    %cst_2 = arith.constant dense<0.000000e+00> : vector<32xf32>
    %8 = vector.multi_reduction <add>, %7, %cst_2 [0] : vector<8x32xf32> to vector<32xf32>
    %9 = vector.shape_cast %8 : vector<32xf32> to vector<1x32xf32>
    %cst_3 = arith.constant 1.250000e-01 : f32
    %10 = vector.broadcast %cst_3 : f32 to vector<1x32xf32>
    %11 = arith.mulf %9, %10 : vector<1x32xf32>
    %c0_4 = arith.constant 0 : index
    %c0_5 = arith.constant 0 : index
    %12 = vector.load %arg2[%c0_4, %c0_5] : memref<1x32xf32, #tpu.memory_space<vmem>>, vector<1x32xf32>
    %cst_6 = arith.constant 9.99999974E-6 : f32
    %13 = vector.broadcast %cst_6 : f32 to vector<1x32xf32>
    %14 = arith.addf %11, %13 : vector<1x32xf32>
    %15 = math.rsqrt %14 : vector<1x32xf32>
    %16 = arith.mulf %12, %15 : vector<1x32xf32>
    %17 = vector.broadcast %16 : vector<1x32xf32> to vector<8x32xf32>
    %18 = arith.mulf %6, %17 : vector<8x32xf32>
    %c0_7 = arith.constant 0 : index
    %c0_8 = arith.constant 0 : index
    %19 = vector.load %arg3[%c0_7, %c0_8] : memref<1x32xf32, #tpu.memory_space<vmem>>, vector<1x32xf32>
    %20 = vector.broadcast %19 : vector<1x32xf32> to vector<8x32xf32>
    %21 = arith.addf %18, %20 : vector<8x32xf32>
    %c0_9 = arith.constant 0 : index
    %c0_10 = arith.constant 0 : index
    %22 = vector.load %arg4[%c0_9, %c0_10] : memref<32x10xf32, #tpu.memory_space<vmem>>, vector<32x10xf32>
    %cst_11 = arith.constant dense<0.000000e+00> : vector<8x10xf32>
    %23 = tpu.matmul %21, %22, %cst_11 {dimension_numbers = #tpu.dot_dimension_numbers<[1], [0], [0], [1], [0, 0, 1, 1], [], []>} : vector<8x32xf32>, vector<32x10xf32>, vector<8x10xf32> -> vector<8x10xf32>
    %c0_12 = arith.constant 0 : index
    %c0_13 = arith.constant 0 : index
    %24 = vector.load %arg5[%c0_12, %c0_13] : memref<1x10xf32, #tpu.memory_space<vmem>>, vector<1x10xf32>
    %25 = vector.broadcast %24 : vector<1x10xf32> to vector<8x10xf32>
    %26 = arith.addf %23, %25 : vector<8x10xf32>
    %cst_14 = arith.constant dense<0xFF800000> : vector<8xf32>
    %27 = vector.multi_reduction <maximumf>, %26, %cst_14 [1] : vector<8x10xf32> to vector<8xf32>
    %28 = vector.shape_cast %27 : vector<8xf32> to vector<8x1xf32>
    %29 = vector.broadcast %28 : vector<8x1xf32> to vector<8x10xf32>
    %30 = arith.subf %26, %29 : vector<8x10xf32>
    %31 = math.exp %30 : vector<8x10xf32>
    %cst_15 = arith.constant dense<0.000000e+00> : vector<8xf32>
    %32 = vector.multi_reduction <add>, %31, %cst_15 [1] : vector<8x10xf32> to vector<8xf32>
    %33 = vector.shape_cast %32 : vector<8xf32> to vector<8x1xf32>
    %34 = math.log %33 : vector<8x1xf32>
    %35 = vector.broadcast %34 : vector<8x1xf32> to vector<8x10xf32>
    %36 = arith.subf %30, %35 : vector<8x10xf32>
    %c0_16 = arith.constant 0 : index
    %c0_17 = arith.constant 0 : index
    %37 = vector.load %arg6[%c0_16, %c0_17] : memref<8x10xf32, #tpu.memory_space<vmem>>, vector<8x10xf32>
    tpu.vector_store %arg6[%c0_16, %c0_17], %36 {strides = array<i32>} : memref<8x10xf32, #tpu.memory_space<vmem>>, vector<8x10xf32>,
    return
  }
  func.func @transform_0(%arg0: i32) -> (i32, i32) {
    %c0_i32 = arith.constant 0 : i32
    %c0_i32_0 = arith.constant 0 : i32
    %c0_i32_1 = arith.constant 0 : i32
    return %c0_i32, %c0_i32_0 : i32, i32
  }
  func.func @transform_1(%arg0: i32) -> (i32, i32) {
    %c0_i32 = arith.constant 0 : i32
    %c0_i32_0 = arith.constant 0 : i32
    %c0_i32_1 = arith.constant 0 : i32
    return %c0_i32, %c0_i32_0 : i32, i32
  }
  func.func @transform_2(%arg0: i32) -> (i32, i32) {
    %c0_i32 = arith.constant 0 : i32
    %c0_i32_0 = arith.constant 0 : i32
    %c0_i32_1 = arith.constant 0 : i32
    return %c0_i32, %c0_i32_0 : i32, i32
  }
  func.func @transform_3(%arg0: i32) -> (i32, i32) {
    %c0_i32 = arith.constant 0 : i32
    %c0_i32_0 = arith.constant 0 : i32
    %c0_i32_1 = arith.constant 0 : i32
    return %c0_i32, %c0_i32_0 : i32, i32
  }
  func.func @transform_4(%arg0: i32) -> (i32, i32) {
    %c0_i32 = arith.constant 0 : i32
    %c0_i32_0 = arith.constant 0 : i32
    %c0_i32_1 = arith.constant 0 : i32
    return %c0_i32, %c0_i32_0 : i32, i32
  }
  func.func @transform_5(%arg0: i32) -> (i32, i32) {
    %c0_i32 = arith.constant 0 : i32
    %c0_i32_0 = arith.constant 0 : i32
    %c0_i32_1 = arith.constant 0 : i32
    return %c0_i32, %c0_i32_0 : i32, i32
  }
}

</mosaic_0001>

<bundles_post_ra>
// kernel: tpu_custom_call.1
= control target key start
LH: loop header
LB: loop body
LE: loop exit
PB: predicated region body
PF: predicated region fallthrough
CT: control target
= control target key end

     0   :  { %v231_v3 = vmov 0.0|0.0   ;;  %vm232_vm0 = vmmov 0   ;;  %v233_v6 = vmov 0.0   ;;  %vm22_vm1 = vcmask 261120   ;;  %s307_s0 = inlined_call_operand.vmem [shape: f32[8,32], index: 0, kind: input, shape index: {}]   ;;  %s308_s1 = inlined_call_operand.vmem [shape: f32[1,32], index: 1, kind: input, shape index: {}]   ;;  %s309_s2 = inlined_call_operand.vmem [shape: f32[1,32], index: 2, kind: input, shape index: {}]   ;;  %s310_s3 = inlined_call_operand.vmem [shape: f32[32,10], index: 3, kind: input, shape index: {}]   ;;  %s311_s4 = inlined_call_operand.vmem [shape: f32[1,10], index: 4, kind: input, shape index: {}]   ;;  %s312_s5 = inlined_call_operand.hbm [shape: f32[8,10], index: 5, kind: output, shape index: {}]  }
   0x1   :  { %v60_v0 = vld [vmem:[%s310_s3] sm:$0xff]  ;;  %v61_v1 = vld [vmem:[%s310_s3 + $0x8] sm:$0xff]  ;;  %v62_v2 = vld [vmem:[%s310_s3 + $0x10] sm:$0xff]  ;;  %191 = vmatprep.subr.bf16.mxu0 %v231_v3  ;;  %188 = vmatprep.mubr.msk.f32.mxu0 %vm232_vm0, %v233_v6 }
   0x2   :  { %v192_v4 = vpack.c.bf16 %v61_v1, %v60_v0  ;;  %v63_v5 = vld [vmem:[%s310_s3 + $0x18] sm:$0xff]  ;;  %v21_v7 = vld [vmem:[%s307_s0] sm:$0xff] }
   0x3   :  { %v23_v8 = vsel %vm22_vm1, %v21_v7, 0.0  ;;  %v195_v9 = vpack.c.bf16 %v63_v5, %v62_v2 }
   0x4   :  { %193 = vmatpush3.bf16.msra.mxu0 %v192_v4  ;;  %v24_v10 = vrot.slane %v23_v8, 4 }
   0x5   :  { %10 = vsyncpa [#allocation3], 0  ;;  %194 = vmatprep.subr.bf16.mxu0 %v231_v3  ;;  %v46_v28 = vlaneseq  ;;  %v41_v30 = vld [vmem:[%s308_s1] sm:$0x1]  ;;  %vm144_vm2 = vcmask 80896   ;;  %s234_s1 = smov [#allocation2]  }
   0x6   :  { %v25_v11 = vadd.f32 %v24_v10, %v23_v8  ;;  %v172_v35 = vld [vmem:[%s309_s2] ss:$0 sm:$0xff]  ;;  %s164_s2 = sshll.u32 %s234_s1, 4  ;;  %s165_s2 = int_to_ptr.vmem [resolvable:$true] %s164_s2 }
   0x7   :  { %v47_v29 = vshrl.u32 %v46_v28, 7  ;;  %v173_v38 = vld [vmem:[%s311_s4] ss:$0 sm:$0xff]  ;;  %s207_s4 = scalar_lea.vmem %s165_s2, 128  ;;  %p212_p1 = scmp.lt.s32.totalorder %s165_s2, %s165_s2 }
   0x8   :  { %196 = vmatpush3.bf16.msra.mxu0 %v195_v9  ;;  %v26_v12 = vrot.slane %v25_v11, 2  ;;  %p208_p0 = scmp.ne.s32.totalorder %s165_s2, %s207_s4  ;;  %p213_p2 = scmp.lt.s32.totalorder %s207_s4, %s207_s4 }
   0x9   :  { %v48_v31 = vsub.s32 0, %v47_v29 }
   0xa   :  { %v27_v13 = vadd.f32 %v26_v12, %v25_v11  ;;  %p214_p3 = por %p213_p2, %p212_p1 }
   0xc   :  { %v28_v14 = vrot.slane %v27_v13, 1  ;;  %p215_p4 = pnand %p214_p3, %p208_p0 }
   0xe   :  { %v29_v15 = vadd.f32 %v28_v14, %v27_v13 }
  0x10   :  { %v30_v16 = vmul.f32 0.125, %v29_v15 }
  0x12   :  { %v31_v17 = vsub.f32 %v21_v7, %v30_v16 }
  0x14   :  { %v32_v18 = vmul.f32 %v31_v17, %v31_v17 }
  0x16   :  { %v33_v19 = vsel %vm22_vm1, %v32_v18, 0.0 }
  0x17   :  { %v34_v20 = vrot.slane %v33_v19, 4 }
  0x19   :  { %v35_v21 = vadd.f32 %v34_v20, %v33_v19 }
  0x1b   :  { %v36_v22 = vrot.slane %v35_v21, 2 }
  0x1d   :  { %v37_v23 = vadd.f32 %v36_v22, %v35_v21 }
  0x1f   :  { %v38_v24 = vrot.slane %v37_v23, 1 }
  0x21   :  { %v39_v25 = vadd.f32 %v38_v24, %v37_v23 }
  0x23   :  { %v40_v26 = vmul.f32 0.125, %v39_v25 }
  0x25   :  { %v42_v27 = vadd.f32 1e-05, %v40_v26 }
  0x27   :  { %201 = vrsqrt.f32 %v42_v27 }
  0x31   :  { %v202_v32 = vpop.eup %201 }
  0x32   :  { %v44_v33 = vmul.f32 %v202_v32, %v41_v30 }
  0x34   :  { %v49_v34 = vrot.slane %v44_v33, %v48_v31 }
  0x36   :  { %v51_v36 = vmul.f32 %v49_v34, %v31_v17 }
  0x38   :  { %v59_v37 = vadd.f32 %v172_v35, %v51_v36 }
  0x3a   :  { %189 = vmatmul.mubr.msk.f32.vlgmr.msra.gmra.mrb[0].mxu0 %vm22_vm1, %v59_v37 }
 0x10d   :  { %v140_v39 = vpop.f32.mrb[0].mxu0 }
 0x10e   :  { %v141_v40 = vadd.f32 %v173_v38, %v140_v39  ;;  %v190_v41 = vpop.f32.mrb[1].mxu0 }
 0x110   :  { %v145_v42 = vsel %vm144_vm2, %v141_v40, -inf }
 0x111   :  { %146 = vmax.xlane.f32.xlu0 %v145_v42 }
 0x19e   :  { %v147_v43 = vpop.xlane.xlu0 %146 }
 0x19f   :  { %v148_v44 = vsub.f32 %v141_v40, %v147_v43 }
 0x1a1   :  { %v149_v45 = vmul.f32 1.442695, %v148_v44 }
 0x1a3   :  { %203 = vpow2.f32 %v149_v45 }
 0x1ad   :  { %v204_v46 = vpop.eup %203 }
 0x1ae   :  { %v151_v47 = vsel %vm144_vm2, %v204_v46, 0.0 }
 0x1af   :  { %152 = vadd.xlane.f32.xlu0 %v151_v47 }
 0x23c   :  { %v153_v48 = vpop.xlane.xlu0 %152 }
 0x23d   :  { %205 = vlog2.f32 %v153_v48 }
 0x247   :  { %v206_v49 = vpop.eup %205 }
 0x248   :  { %v155_v50 = vmul.f32 0.6931472, %v206_v49 }
 0x24a   :  { %v156_v51 = vsub.f32 %v148_v44, %v155_v50 }
 0x24c   :  { %157 = vst.msk [vmem:[#allocation2] sm:$0xff] %vm144_vm2, %v156_v51 }
 0x24d   :  { %218 = shalt.err (!%p215_p4)
}
 0x24e   :  { %s219_s9 = scalar_lea.hbm %s312_s5, 128 }
 0x24f   :  { %p220_p5 = scmp.ne.s32.totalorder %s312_s5, %s219_s9  ;;  %p223_p6 = scmp.lt.u32.totalorder %s219_s9, %s312_s5 }
 0x251   :  { %p225_p7 = pnand %p223_p6, %p220_p5 }
 0x253   :  { %228 = shalt.err (!%p225_p7)
}
 0x254   :  { %167 = dma.vmem_to_hbm [thread:$0]  %s165_s2, 128, %s312_s5, [#allocation3]  }
 0x255   :  { %229 = dma.done.wait [#allocation3], 128  }
 0x256   :  { %230 = vsyncadd [#allocation3], 4294967168 }
 0x257   :  { %171 = vsyncpa [#allocation3], 1 }

</bundles_post_ra>
